<compile_context>
chip_gen: v5e
topology: v5e:2x2
jax: 0.10.0
libtpu: 0.0.40
codegen_flags: <defaults>
</compile_context>

<pallas_src>
import functools

import jax
import jax.numpy as jnp
from jax.experimental import pallas as pl
from jax.experimental.pallas import tpu as pltpu

_LANE = 128


def _round_up(x, m):
    return ((x + m - 1) // m) * m


def mlp_kernel(x_ref, w1_ref, b1_ref, w2_ref, b2_ref, o_ref):
    # In-kernel cast to bf16 (VPU has slack; saves an extra HBM pass vs. a
    # wrapper-level astype).  fc1 on the MXU with f32 accumulation.
    x = x_ref[...].astype(jnp.bfloat16)
    h = jnp.dot(x, w1_ref[...], preferred_element_type=jnp.float32)
    h = jnp.maximum(h + b1_ref[...], 0.0)

    # fc2 (lane-dense: padded classes have zero weights / -1e30 bias).
    logits = jnp.dot(h.astype(w2_ref.dtype), w2_ref[...],
                     preferred_element_type=jnp.float32)
    logits = logits + b2_ref[...]

    # Numerically-stable softmax over classes (dim=1); fake classes -> exp(.)=0.
    m = jnp.max(logits, axis=1, keepdims=True)
    e = jnp.exp(logits - m)                                   # EUP
    denom = jnp.sum(e, axis=1, keepdims=True)
    o_ref[...] = (e * pl.reciprocal(denom, approx=True)).astype(o_ref.dtype)


def prepare_params(w1, b1, w2, b2):
    """One-time prep (outside hot path): (out,in)->(in,out), bf16 weights,
    and lane-dense padding of the class dimension to 128."""
    w1_t = jnp.asarray(w1).T.astype(jnp.bfloat16)            # (in_f, hidden)
    w2_t = jnp.asarray(w2).T.astype(jnp.bfloat16)            # (hidden, nc)
    b1_r = jnp.asarray(b1, jnp.float32).reshape(1, -1)        # (1, hidden)
    b2_f = jnp.asarray(b2, jnp.float32)                       # (nc,)

    nc = w2_t.shape[1]
    nc_pad = _round_up(nc, _LANE)
    if nc_pad != nc:
        w2_t = jnp.pad(w2_t, ((0, 0), (0, nc_pad - nc)))                  # zero cols
        b2_f = jnp.pad(b2_f, (0, nc_pad - nc), constant_values=-1e30)     # dead logits
    b2_r = b2_f.reshape(1, -1)                                # (1, nc_pad)
    return w1_t, b1_r, w2_t, b2_r


def _vmem_capacity_bytes():
    try:
        return int(pltpu.get_tpu_info().vmem_capacity_bytes)
    except Exception:
        return 64 << 20  # conservative fallback (v7x per-TensorCore)


def _plan(n, in_f, hidden, nc_pad, x_itemsize, tm_req):
    """Pick the batch tile TM and a generation-aware vmem limit (host-side)."""
    vmem_cap = _vmem_capacity_bytes()
    budget = int(0.7 * vmem_cap)

    # Resident weights/biases, counted double-buffered (default pipelining).
    # (pl.Buffered(1) on the constant-index weight specs would reclaim ~0.8 MiB
    #  on v7x; skipped here to keep lowering maximally portable.)
    fixed = 2 * (in_f * hidden * 2 + hidden * nc_pad * 2 + hidden * 4 + nc_pad * 4)

    # Per-batch-row bytes: double-buffered x tile (native dtype) + in-kernel
    # bf16 copy + f32/bf16 hidden + logits/exp scratch + double-buffered f32 out.
    per_row = (2 * in_f * x_itemsize + in_f * 2
               + hidden * 4 + hidden * 2
               + 3 * nc_pad * 4
               + 2 * nc_pad * 4)

    if tm_req is None:
        tm = max(8, ((budget - fixed) // per_row) // 8 * 8)
        tm = min(tm, 2048)
        # Keep >= 2 grid steps so both v7x TensorCores get work (harmless on
        # single-TC v5e/v6e).
        if n > 8:
            tm = min(tm, _round_up(pl.cdiv(n, 2), 8))
    else:
        tm = max(8, _round_up(int(tm_req), 8))
    tm = min(tm, _round_up(n, 8))
    tm = max(tm, 8)

    vmem_est = fixed + tm * per_row
    vmem_limit = max(2 * vmem_est, 4 << 20)
    vmem_limit = int(min(vmem_limit, int(0.9 * vmem_cap)))
    vmem_limit = max(vmem_limit, min(vmem_est + (1 << 20), int(0.9 * vmem_cap)))
    return tm, vmem_limit


@functools.partial(jax.jit, static_argnames=("num_classes", "tm", "vmem_limit"))
def _net_forward_impl(x, w1_t, b1_r, w2_t, b2_r, *, num_classes, tm, vmem_limit):
    n, in_f = x.shape
    hidden = w1_t.shape[1]
    nc_pad = w2_t.shape[1]
    grid = (pl.cdiv(n, tm),)

    cost = pl.CostEstimate(
        flops=2 * n * (in_f * hidden + hidden * nc_pad),
        transcendentals=n * nc_pad,
        bytes_accessed=(n * in_f * x.dtype.itemsize        # x at its real dtype
                        + in_f * hidden * 2 + hidden * nc_pad * 2
                        + hidden * 4 + nc_pad * 4
                        + n * nc_pad * 4),
    )

    out = pl.pallas_call(
        mlp_kernel,
        out_shape=jax.ShapeDtypeStruct((n, nc_pad), jnp.float32),
        grid_spec=pltpu.PrefetchScalarGridSpec(
            num_scalar_prefetch=0,
            grid=grid,
            in_specs=[
                pl.BlockSpec((tm, in_f), lambda i: (i, 0)),             # x tile (native dtype)
                pl.BlockSpec((in_f, hidden), lambda i: (0, 0)),         # W1 resident
                pl.BlockSpec((1, hidden), lambda i: (0, 0)),            # b1 resident
                pl.BlockSpec((hidden, nc_pad), lambda i: (0, 0)),       # W2 resident (lane-dense)
                pl.BlockSpec((1, nc_pad), lambda i: (0, 0)),            # b2 resident
            ],
            out_specs=pl.BlockSpec((tm, nc_pad), lambda i: (i, 0)),     # lane-dense output
        ),
        compiler_params=pltpu.CompilerParams(
            dimension_semantics=("parallel",),
            vmem_limit_bytes=vmem_limit,
        ),
        cost_estimate=cost,
    )(x, w1_t, b1_r, w2_t, b2_r)

    return out[:, :num_classes] if nc_pad != num_classes else out


def net_forward(x, w1_t, b1_r, w2_t, b2_r, *, num_classes, tm=None):
    """x: (N, input_size) f32/bf16 (cast happens in-kernel); params from prepare_params()."""
    n, in_f = x.shape
    hidden = w1_t.shape[1]
    nc_pad = w2_t.shape[1]
    tm_eff, vmem_limit = _plan(n, in_f, hidden, nc_pad,
                               jnp.dtype(x.dtype).itemsize, tm)
    return _net_forward_impl(x, w1_t, b1_r, w2_t, b2_r,
                             num_classes=num_classes, tm=tm_eff,
                             vmem_limit=vmem_limit)


if __name__ == "__main__":
    # Module-consistent shapes: flattened 32x32x3 CIFAR input, 10 classes.
    batch = 30            # deliberately not a multiple of 8 -> partial last tile
    input_size = 3072
    hidden_size = 128
    num_classes = 10

    key = jax.random.PRNGKey(0)
    kx, k1, k2, k3, k4 = jax.random.split(key, 5)

    bound1 = 1.0 / (input_size ** 0.5)
    bound2 = 1.0 / (hidden_size ** 0.5)
    x = jax.random.normal(kx, (batch, input_size), jnp.float32)
    w1 = jax.random.uniform(k1, (hidden_size, input_size), jnp.float32, -bound1, bound1)
    b1 = jax.random.uniform(k2, (hidden_size,), jnp.float32, -bound1, bound1)
    w2 = jax.random.uniform(k3, (num_classes, hidden_size), jnp.float32, -bound2, bound2)
    b2 = jax.random.uniform(k4, (num_classes,), jnp.float32, -bound2, bound2)

    # One-time parameter prep (transpose + bf16 + lane-dense class padding).
    params = prepare_params(w1, b1, w2, b2)

    # Pure-JAX f32 reference (kernel uses bf16 matmul operands -> loose tol).
    h_ref = jnp.maximum(x @ w1.T + b1, 0.0)
    logits_ref = h_ref @ w2.T + b2
    ref = jax.nn.softmax(logits_ref, axis=1)

    # Path 1: explicit small tile -> multi-step grid with a ragged last block.
    out_small = jax.block_until_ready(
        net_forward(x, *params, num_classes=num_classes, tm=8))
    # Path 2: auto (generation-aware) tile selection.
    out_auto = jax.block_until_ready(
        net_forward(x, *params, num_classes=num_classes))

    for out in (out_small, out_auto):
        assert out.shape == (batch, num_classes)
        assert jnp.allclose(out, ref, atol=2e-2, rtol=2e-2), "mismatch vs reference"
        assert jnp.allclose(jnp.sum(out, axis=1), 1.0, atol=5e-3), "rows not normalized"

    print("KERNEL_OK")
</pallas_src>

<mosaic_0001>
module attributes {stable_mosaic.version = 11 : i64} {
  func.func @mlp_kernel(%arg0: i32, %arg1: memref<8x3072xf32, #tpu.memory_space<vmem>>, %arg2: memref<3072x128xbf16, #tpu.memory_space<vmem>>, %arg3: memref<1x128xf32, #tpu.memory_space<vmem>>, %arg4: memref<128x128xbf16, #tpu.memory_space<vmem>>, %arg5: memref<1x128xf32, #tpu.memory_space<vmem>>, %arg6: memref<8x128xf32, #tpu.memory_space<vmem>>) attributes {dimension_semantics = [#tpu.dimension_semantics<parallel>], iteration_bounds = array<i64: 4>, scalar_prefetch = 0 : i64, scratch_operands = 0 : i64, tpu.core_type = #tpu.core_type<tc>, window_params = [{transform_indices = @transform_0, window_bounds = array<i64: 8, 3072>}, {pipeline_mode = #tpu.pipeline_mode<synchronous>, transform_indices = @transform_1, window_bounds = array<i64: 3072, 128>}, {pipeline_mode = #tpu.pipeline_mode<synchronous>, transform_indices = @transform_2, window_bounds = array<i64: 1, 128>}, {pipeline_mode = #tpu.pipeline_mode<synchronous>, transform_indices = @transform_3, window_bounds = array<i64: 128, 128>}, {pipeline_mode = #tpu.pipeline_mode<synchronous>, transform_indices = @transform_4, window_bounds = array<i64: 1, 128>}, {transform_indices = @transform_5, window_bounds = array<i64: 8, 128>}]} {
    %c0 = arith.constant 0 : index
    %c0_0 = arith.constant 0 : index
    %0 = vector.load %arg1[%c0, %c0_0] : memref<8x3072xf32, #tpu.memory_space<vmem>>, vector<8x3072xf32>
    %1 = arith.truncf %0 : vector<8x3072xf32> to vector<8x3072xbf16>
    %c0_1 = arith.constant 0 : index
    %c0_2 = arith.constant 0 : index
    %2 = vector.load %arg2[%c0_1, %c0_2] : memref<3072x128xbf16, #tpu.memory_space<vmem>>, vector<3072x128xbf16>
    %cst = arith.constant dense<0.000000e+00> : vector<8x128xf32>
    %3 = tpu.matmul %1, %2, %cst {dimension_numbers = #tpu.dot_dimension_numbers<[1], [0], [0], [1], [0, 0, 1, 1], [], []>} : vector<8x3072xbf16>, vector<3072x128xbf16>, vector<8x128xf32> -> vector<8x128xf32>
    %c0_3 = arith.constant 0 : index
    %c0_4 = arith.constant 0 : index
    %4 = vector.load %arg3[%c0_3, %c0_4] : memref<1x128xf32, #tpu.memory_space<vmem>>, vector<1x128xf32>
    %5 = vector.broadcast %4 : vector<1x128xf32> to vector<8x128xf32>
    %6 = arith.addf %3, %5 : vector<8x128xf32>
    %cst_5 = arith.constant 0.000000e+00 : f32
    %7 = vector.broadcast %cst_5 : f32 to vector<8x128xf32>
    %8 = arith.maximumf %6, %7 : vector<8x128xf32>
    %9 = arith.truncf %8 : vector<8x128xf32> to vector<8x128xbf16>
    %c0_6 = arith.constant 0 : index
    %c0_7 = arith.constant 0 : index
    %10 = vector.load %arg4[%c0_6, %c0_7] : memref<128x128xbf16, #tpu.memory_space<vmem>>, vector<128x128xbf16>
    %cst_8 = arith.constant dense<0.000000e+00> : vector<8x128xf32>
    %11 = tpu.matmul %9, %10, %cst_8 {dimension_numbers = #tpu.dot_dimension_numbers<[1], [0], [0], [1], [0, 0, 1, 1], [], []>} : vector<8x128xbf16>, vector<128x128xbf16>, vector<8x128xf32> -> vector<8x128xf32>
    %c0_9 = arith.constant 0 : index
    %c0_10 = arith.constant 0 : index
    %12 = vector.load %arg5[%c0_9, %c0_10] : memref<1x128xf32, #tpu.memory_space<vmem>>, vector<1x128xf32>
    %13 = vector.broadcast %12 : vector<1x128xf32> to vector<8x128xf32>
    %14 = arith.addf %11, %13 : vector<8x128xf32>
    %cst_11 = arith.constant dense<0xFF800000> : vector<8xf32>
    %15 = vector.multi_reduction <maximumf>, %14, %cst_11 [1] : vector<8x128xf32> to vector<8xf32>
    %16 = vector.shape_cast %15 : vector<8xf32> to vector<8x1xf32>
    %17 = vector.broadcast %16 : vector<8x1xf32> to vector<8x128xf32>
    %18 = arith.subf %14, %17 : vector<8x128xf32>
    %19 = math.exp %18 : vector<8x128xf32>
    %cst_12 = arith.constant dense<0.000000e+00> : vector<8xf32>
    %20 = vector.multi_reduction <add>, %19, %cst_12 [1] : vector<8x128xf32> to vector<8xf32>
    %21 = vector.shape_cast %20 : vector<8xf32> to vector<8x1xf32>
    %22 = tpu.reciprocal %21 {approx = true} : vector<8x1xf32> -> vector<8x1xf32>
    %23 = vector.broadcast %22 : vector<8x1xf32> to vector<8x128xf32>
    %24 = arith.mulf %19, %23 : vector<8x128xf32>
    %c0_13 = arith.constant 0 : index
    %c0_14 = arith.constant 0 : index
    %25 = vector.load %arg6[%c0_13, %c0_14] : memref<8x128xf32, #tpu.memory_space<vmem>>, vector<8x128xf32>
    tpu.vector_store %arg6[%c0_13, %c0_14], %24 {strides = array<i32>} : memref<8x128xf32, #tpu.memory_space<vmem>>, vector<8x128xf32>,
    return
  }
  func.func @transform_0(%arg0: i32) -> (i32, i32) {
    %c0_i32 = arith.constant 0 : i32
    %c0_i32_0 = arith.constant 0 : i32
    return %arg0, %c0_i32 : i32, i32
  }
  func.func @transform_1(%arg0: i32) -> (i32, i32) {
    %c0_i32 = arith.constant 0 : i32
    %c0_i32_0 = arith.constant 0 : i32
    %c0_i32_1 = arith.constant 0 : i32
    return %c0_i32, %c0_i32_0 : i32, i32
  }
  func.func @transform_2(%arg0: i32) -> (i32, i32) {
    %c0_i32 = arith.constant 0 : i32
    %c0_i32_0 = arith.constant 0 : i32
    %c0_i32_1 = arith.constant 0 : i32
    return %c0_i32, %c0_i32_0 : i32, i32
  }
  func.func @transform_3(%arg0: i32) -> (i32, i32) {
    %c0_i32 = arith.constant 0 : i32
    %c0_i32_0 = arith.constant 0 : i32
    %c0_i32_1 = arith.constant 0 : i32
    return %c0_i32, %c0_i32_0 : i32, i32
  }
  func.func @transform_4(%arg0: i32) -> (i32, i32) {
    %c0_i32 = arith.constant 0 : i32
    %c0_i32_0 = arith.constant 0 : i32
    %c0_i32_1 = arith.constant 0 : i32
    return %c0_i32, %c0_i32_0 : i32, i32
  }
  func.func @transform_5(%arg0: i32) -> (i32, i32) {
    %c0_i32 = arith.constant 0 : i32
    %c0_i32_0 = arith.constant 0 : i32
    return %arg0, %c0_i32 : i32, i32
  }
}

</mosaic_0001>

<bundles_post_ra>
// kernel: _net_forward_impl.1
= control target key start
LH: loop header
LB: loop body
LE: loop exit
PB: predicated region body
PF: predicated region fallthrough
CT: control target
= control target key end

     0   :  { %10 = vsyncpa [#allocation3], 0  ;;  %s3741_s0 = inlined_call_operand.hbm [shape: f32[30,3072], index: 0, kind: input, shape index: {}]   ;;  %s3742_s1 = inlined_call_operand.hbm [shape: bf16[3072,128], index: 1, kind: input, shape index: {}]   ;;  %s3743_s2 = inlined_call_operand.vmem [shape: f32[1,128], index: 2, kind: input, shape index: {}]   ;;  %s3744_s3 = inlined_call_operand.hbm [shape: bf16[128,128], index: 3, kind: input, shape index: {}]   ;;  %s3745_s4 = inlined_call_operand.vmem [shape: f32[1,128], index: 4, kind: input, shape index: {}]   ;;  %s3746_s5 = inlined_call_operand.vmem [shape: f32[30,128], index: 5, kind: output, shape index: {}]  }
   0x1   :  { %12 = vsyncpa [#allocation3 + $0x1], 0 }
   0x2   :  { %13 = vsyncpa [#allocation5], 0  ;;  %s3600_s18 = smov 0   ;;  %s3602_s19 = smov 0  }
   0x3   :  { %s3604_s20 = smov 0   ;;  %s3606_s21 = smov 0  }
   0x4 LB: > { %s171_s24 = sshll.u32 %s3742_s1, 4  ;;  %s3624_s25 = sadd.s32 4294967295, %s3564_s21   ;;  %s3564_s21 = sphi %s3606_s21, %s3753_s21   ;;  %s3560_s20 = sphi %s3604_s20, %s3752_s20   ;;  %s3556_s19 = sphi %s3602_s19, %s3751_s19   ;;  %s3552_s18 = sphi %s3600_s18, %s3750_s18   ;;  %s172_s24 = int_to_ptr.hbm [resolvable:$true] %s171_s24 }
   0x5   : > { %p2354_p0 = scmp.ge.s32.totalorder %s3564_s21, 1  ;;  %p40_p1 = scmp.eq.s32.totalorder %s3624_s25, 0 }
   0x6   : > { %p160_p2 = scmp.lt.s32.totalorder %s3564_s21, 5  ;;  %s3566_s27 = smov [#allocation4]  }
   0x7   : > { %s173_s28 = sshll.u32 %s3566_s27, 4  ;;  %s188_s6 = sshll.u32 %s3744_s3, 4  ;;  %s174_s28 = int_to_ptr.vmem [resolvable:$true] %s173_s28  ;;  %s189_s6 = int_to_ptr.hbm [resolvable:$true] %s188_s6 }
   0x8   : > { %p3629_p3 = pnand %p2354_p0, %p160_p2  ;;  %s3567_s7 = smov [#allocation6]  }
   0x9   : > { %s190_s8 = sshll.u32 %s3567_s7, 4  ;;  %s3568_s9 = smov 64   ;;  %s191_s8 = int_to_ptr.vmem [resolvable:$true] %s190_s8 }
   0xa   : > { %p3378_p4 = pneg %p3629_p3  ;;  %s3569_s10 = smov 4  }
   0xb   : > { %s3641_s11 = sadd.s32 1, %s3564_s21   ;;  %s26_s12 = sadd.s32 1, %s3560_s20 }
   0xc   : > { %p3379_p5 = pnand %p3378_p4, %p40_p1  ;;  %s23_s13 = ssub.s32 %s3564_s21, %s3641_s11 }
   0xd   : > { %p33_p6 = scmp.ne.s32.totalorder %s3560_s20, %s3556_s19  ;;  %p24_p7 = scmp.eq.s32.totalorder %s23_s13, 0 }
   0xe   : > { %3381 = dma.hbm_to_vmem [thread:$0]  (!%p3379_p5), %s172_s24, 24576, %s174_s28, [#allocation5], %s3568_s9, %s3568_s9, %s3569_s10  }
   0xf   : > { %3384 = dma.hbm_to_vmem [thread:$0]  (!%p3379_p5), %s189_s6, 1024, %s191_s8, [#allocation5], %s3568_s9, %s3568_s9, %s3569_s10  }
  0x10   : > { %p34_p8 = scmp.eq.s32.totalorder %s3564_s21, 0  ;;  %p39_p9 = scmp.ne.s32.totalorder %s3556_s19, %s3552_s18 }
  0x11   : > { %p3391_p10 = scmp.lt.s32.totalorder %s3564_s21, 4  ;;  %s207_s16 = sand.u32 1, %s3560_s20  }
  0x12   : > { %s3653_s14 = scalar_select %p24_p7, %s3560_s20, %s26_s12  }
  0x13   : > { %p35_p11 = por %p34_p8, %p33_p6  ;;  %p3657_p12 = por %p40_p1, %p39_p9 }
  0x14   : > { %s3366_s17 = smul.u32 192, %s3564_s21  ;;  %s208_s6 = scalar_lea.sflag [#allocation3], %s207_s16 }
  0x15   : > { %s3365_s22 = smul.u32 192, %s207_s16  ;;  %p3666_p13 = pnand %p3391_p10, %p35_p11 }
  0x16   : > { %s216_s27 = scalar_lea.hbm %s3741_s0, %s3366_s17  ;;  %s3503_s10 = scalar_lea.hbm %s3741_s0, 768 }
  0x17   : > { %s218_s18 = sshll.u32 %s216_s27, 4  ;;  %s211_s29 = scalar_lea.vmem [#allocation2], %s3365_s22  ;;  %s219_s18 = int_to_ptr.hbm [resolvable:$true] %s218_s18 }
  0x18   : > { %s220_s30 = sshll.u32 %s211_s29, 4  ;;  %s3496_s7 = sshra.s32 %s219_s18, 4  ;;  %s221_s30 = int_to_ptr.vmem [resolvable:$true] %s220_s30  ;;  %s3497_s7 = int_to_ptr.hbm [resolvable:$true] %s3496_s7 }
  0x19   : > { %s3498_s8 = scalar_lea.hbm %s3497_s7, 192  ;;  %p3500_p2 = pneg %p3666_p13 }
  0x1a   : > { %p3499_p0 = scmp.ne.s32.totalorder %s3497_s7, %s3498_s8  ;;  %p3504_p6 = scmp.lt.s32.totalorder %s3497_s7, %s3741_s0 }
  0x1b   : > { %p3505_p7 = scmp.lt.s32.totalorder %s3503_s10, %s3498_s8 }
  0x1c   : > { %p3501_p4 = pnand %p3500_p2, %p3499_p0 }
  0x1d   : > { %p3506_p8 = por %p3505_p7, %p3504_p6 }
  0x1e   : > { %p3502_p5 = pneg %p3501_p4 }
  0x20   : > { %p3507_p9 = pnand %p3506_p8, %p3502_p5 }
  0x22   : > { %3510 = shalt.err (!%p3507_p9)
}
  0x23   : > { %3388 = dma.hbm_to_vmem [thread:$0]  (!%p3666_p13), %s219_s18, 3072, %s221_s30, %s208_s6  }
  0x24   : > { %229 = sbr.rel (%p3629_p3) target bundleno = 759 (0x2f7), region = 40  ;;  %s231_s16 = sand.u32 (!%p3629_p3), 1, %s3556_s19  }
  0x25   : > { %s3367_s17 = smul.u32 (!%p3629_p3), 192, %s231_s16  ;;  %s232_s22 = scalar_lea.sflag (!%p3629_p3), [#allocation3], %s231_s16 }
  0x27   : > { %s3683_s23 = scalar_lea.vmem (!%p3629_p3), [#allocation2], %s3367_s17 }
  0x29   : > { %3543 = dma.done.wait (%p3657_p12), %s232_s22, 3072  }
  0x2a   : > { %3545 = vsyncadd (%p3657_p12), %s232_s22, 4294964224 }
  0x2b   : > { %3547 = dma.done.wait (%p40_p1), [#allocation5], 25600  }
  0x2c   : > { %3549 = vsyncadd (%p40_p1), [#allocation5], 4294941696  ;;  %v3172_v0 = vld [vmem:[#allocation4 + $0x38] sm:$0xff]  ;;  %v3171_v4 = vld [vmem:[#allocation4 + $0x30] sm:$0xff]  ;;  %p272_p1 = scmp.lt.s32.totalorder %s3624_s25, 3 }
  0x2d   : > { %v3180_v1 = vld [vmem:[#allocation4 + $0x78] sm:$0xff]  ;;  %1864 = vmatpush.bf16.msra.mxu0 %v3172_v0  ;;  %v3179_v5 = vld [vmem:[#allocation4 + $0x70] sm:$0xff]  ;;  %v3170_v8 = vld [vmem:[#allocation4 + $0x28] sm:$0xff] }
  0x2e   : > { %v3188_v2 = vld [vmem:[#allocation4 + $0xb8] sm:$0xff]  ;;  %1877 = vmatpush.bf16.msra.mxu1 %v3180_v1  ;;  %v3187_v6 = vld [vmem:[#allocation4 + $0xb0] sm:$0xff]  ;;  %v3178_v9 = vld [vmem:[#allocation4 + $0x68] sm:$0xff]  ;;  %s3755_s25 = smov (!%p272_p1, %s3624_s25), 3 }
  0x2f   : > { %v3196_v3 = vld [vmem:[#allocation4 + $0xf8] sm:$0xff]  ;;  %1890 = vmatpush.bf16.msra.mxu2 %v3188_v2  ;;  %v3195_v7 = vld [vmem:[#allocation4 + $0xf0] sm:$0xff]  ;;  %v3186_v10 = vld [vmem:[#allocation4 + $0xa8] sm:$0xff]  ;;  %s2362_s28 = sshll.u32 %s3755_s25, 3 }
  0x30   : > { %1903 = vmatpush.bf16.msra.mxu3 %v3196_v3  ;;  %v3194_v11 = vld [vmem:[#allocation4 + $0xe8] sm:$0xff]  ;;  %v3169_v12 = vld [vmem:[#allocation4 + $0x20] sm:$0xff]  ;;  %v3168_v16 = vld [vmem:[#allocation4 + $0x18] sm:$0xff]  ;;  %s275_s30 = scalar_lea.vmem %s3746_s5, %s2362_s28 }
  0x31   : > { %1865 = vmatpush.bf16.msra.mxu0 %v3171_v4  ;;  %v3177_v13 = vld [vmem:[#allocation4 + $0x60] sm:$0xff]  ;;  %v3176_v17 = vld [vmem:[#allocation4 + $0x58] sm:$0xff]  ;;  %v3167_v20 = vld [vmem:[#allocation4 + $0x10] sm:$0xff] }
  0x32   : > { %1878 = vmatpush.bf16.msra.mxu1 %v3179_v5  ;;  %v3185_v14 = vld [vmem:[#allocation4 + $0xa0] sm:$0xff]  ;;  %v3184_v18 = vld [vmem:[#allocation4 + $0x98] sm:$0xff]  ;;  %v3175_v21 = vld [vmem:[#allocation4 + $0x50] sm:$0xff] }
  0x33   : > { %1891 = vmatpush.bf16.msra.mxu2 %v3187_v6  ;;  %v3193_v15 = vld [vmem:[#allocation4 + $0xe0] sm:$0xff]  ;;  %v3192_v19 = vld [vmem:[#allocation4 + $0xd8] sm:$0xff]  ;;  %v3183_v22 = vld [vmem:[#allocation4 + $0x90] sm:$0xff] }
  0x34   : > { %1904 = vmatpush.bf16.msra.mxu3 %v3195_v7  ;;  %v3191_v23 = vld [vmem:[#allocation4 + $0xd0] sm:$0xff]  ;;  %v3166_v24 = vld [vmem:[#allocation4 + $0x8] sm:$0xff]  ;;  %v3165_v28 = vld [vmem:[#allocation4] sm:$0xff] }
  0x35   : > { %1866 = vmatpush.bf16.msra.mxu0 %v3170_v8  ;;  %v3174_v25 = vld [vmem:[#allocation4 + $0x48] sm:$0xff]  ;;  %v3173_v29 = vld [vmem:[#allocation4 + $0x40] sm:$0xff]  ;;  %v3204_v32 = vld [vmem:[#allocation4 + $0x138] sm:$0xff] }
  0x36   : > { %1879 = vmatpush.bf16.msra.mxu1 %v3178_v9  ;;  %v3182_v26 = vld [vmem:[#allocation4 + $0x88] sm:$0xff]  ;;  %v3181_v30 = vld [vmem:[#allocation4 + $0x80] sm:$0xff]  ;;  %v278_v33 = vld [vmem:[%s3683_s23 + $0x10] sm:$0xff] }
  0x37   : > { %1892 = vmatpush.bf16.msra.mxu2 %v3186_v10  ;;  %v3190_v27 = vld [vmem:[#allocation4 + $0xc8] sm:$0xff]  ;;  %v3189_v31 = vld [vmem:[#allocation4 + $0xc0] sm:$0xff]  ;;  %v3212_v35 = vld [vmem:[#allocation4 + $0x178] sm:$0xff]  ;;  %v302_v40 = vpack.c.bf16 %v278_v33, %v278_v33 }
  0x38   : > { %1905 = vmatpush.bf16.msra.mxu3 %v3194_v11  ;;  %v276_v34 = vld [vmem:[%s3683_s23] sm:$0xff]  ;;  %v279_v36 = vld [vmem:[%s3683_s23 + $0x18] sm:$0xff]  ;;  %v277_v37 = vld [vmem:[%s3683_s23 + $0x8] sm:$0xff] }
  0x39   : > { %1867 = vmatpush.bf16.msra.mxu0 %v3169_v12  ;;  %v3220_v38 = vld [vmem:[#allocation4 + $0x1b8] sm:$0xff]  ;;  %v300_v41 = vpack.c.bf16 %v276_v34, %v276_v34  ;;  %v303_v42 = vpack.c.bf16 %v279_v36, %v279_v36  ;;  %v301_v43 = vpack.c.bf16 %v277_v37, %v277_v37  ;;  %v3203_v44 = vld [vmem:[#allocation4 + $0x130] sm:$0xff]  ;;  %v3202_v48 = vld [vmem:[#allocation4 + $0x128] sm:$0xff] }
  0x3a   : > { %1880 = vmatpush.bf16.msra.mxu1 %v3177_v13  ;;  %v3228_v39 = vld [vmem:[#allocation4 + $0x1f8] sm:$0xff]  ;;  %v3211_v45 = vld [vmem:[#allocation4 + $0x170] sm:$0xff]  ;;  %v3210_v49 = vld [vmem:[#allocation4 + $0x168] sm:$0xff] }
  0x3b   : > { %1893 = vmatpush.bf16.msra.mxu2 %v3185_v14  ;;  %v3219_v46 = vld [vmem:[#allocation4 + $0x1b0] sm:$0xff]  ;;  %v3218_v50 = vld [vmem:[#allocation4 + $0x1a8] sm:$0xff]  ;;  %v3201_v52 = vld [vmem:[#allocation4 + $0x120] sm:$0xff] }
  0x3c   : > { %1906 = vmatpush.bf16.msra.mxu3 %v3193_v15  ;;  %v3227_v47 = vld [vmem:[#allocation4 + $0x1f0] sm:$0xff]  ;;  %v3226_v51 = vld [vmem:[#allocation4 + $0x1e8] sm:$0xff]  ;;  %v3209_v53 = vld [vmem:[#allocation4 + $0x160] sm:$0xff] }
  0x3d   : > { %1868 = vmatpush.bf16.msra.mxu0 %v3168_v16  ;;  %v3217_v54 = vld [vmem:[#allocation4 + $0x1a0] sm:$0xff]  ;;  %v3200_v56 = vld [vmem:[#allocation4 + $0x118] sm:$0xff]  ;;  %v3199_v60 = vld [vmem:[#allocation4 + $0x110] sm:$0xff] }
  0x3e   : > { %1881 = vmatpush.bf16.msra.mxu1 %v3176_v17  ;;  %v3225_v55 = vld [vmem:[#allocation4 + $0x1e0] sm:$0xff]  ;;  %v3208_v57 = vld [vmem:[#allocation4 + $0x158] sm:$0xff]  ;;  %v3207_v61 = vld [vmem:[#allocation4 + $0x150] sm:$0xff] }
  0x3f   : > { %1894 = vmatpush.bf16.msra.mxu2 %v3184_v18  ;;  %v3216_v58 = vld [vmem:[#allocation4 + $0x198] sm:$0xff]  ;;  %v3215_v62 = vld [vmem:[#allocation4 + $0x190] sm:$0xff]  ;;  %v3198_v0 = vld [vmem:[#allocation4 + $0x108] sm:$0xff] }
  0x40   : > { %1907 = vmatpush.bf16.msra.mxu3 %v3192_v19  ;;  %v3224_v59 = vld [vmem:[#allocation4 + $0x1d8] sm:$0xff]  ;;  %v3223_v63 = vld [vmem:[#allocation4 + $0x1d0] sm:$0xff]  ;;  %v3206_v1 = vld [vmem:[#allocation4 + $0x148] sm:$0xff] }
  0x41   : > { %1869 = vmatpush.bf16.msra.mxu0 %v3167_v20  ;;  %v3214_v2 = vld [vmem:[#allocation4 + $0x188] sm:$0xff]  ;;  %v3197_v4 = vld [vmem:[#allocation4 + $0x100] sm:$0xff]  ;;  %v3236_v8 = vld [vmem:[#allocation4 + $0x238] sm:$0xff] }
  0x42   : > { %1882 = vmatpush.bf16.msra.mxu1 %v3175_v21  ;;  %v3222_v3 = vld [vmem:[#allocation4 + $0x1c8] sm:$0xff]  ;;  %v3205_v5 = vld [vmem:[#allocation4 + $0x140] sm:$0xff]  ;;  %v282_v9 = vld [vmem:[%s3683_s23 + $0x30] sm:$0xff] }
  0x43   : > { %1895 = vmatpush.bf16.msra.mxu2 %v3183_v22  ;;  %v3213_v6 = vld [vmem:[#allocation4 + $0x180] sm:$0xff]  ;;  %v3244_v11 = vld [vmem:[#allocation4 + $0x278] sm:$0xff]  ;;  %v281_v13 = vld [vmem:[%s3683_s23 + $0x28] sm:$0xff]  ;;  %v306_v16 = vpack.c.bf16 %v282_v9, %v282_v9 }
  0x44   : > { %1908 = vmatpush.bf16.msra.mxu3 %v3191_v23  ;;  %v3221_v7 = vld [vmem:[#allocation4 + $0x1c0] sm:$0xff]  ;;  %v283_v12 = vld [vmem:[%s3683_s23 + $0x38] sm:$0xff]  ;;  %v305_v19 = vpack.c.bf16 %v281_v13, %v281_v13  ;;  %v3235_v20 = vld [vmem:[#allocation4 + $0x230] sm:$0xff] }
  0x45   : > { %1870 = vmatpush.bf16.msra.mxu0 %v3166_v24  ;;  %v280_v10 = vld [vmem:[%s3683_s23 + $0x20] sm:$0xff]  ;;  %v3252_v14 = vld [vmem:[#allocation4 + $0x2b8] sm:$0xff]  ;;  %v307_v18 = vpack.c.bf16 %v283_v12, %v283_v12  ;;  %v3243_v21 = vld [vmem:[#allocation4 + $0x270] sm:$0xff] }
  0x46   : > { %1883 = vmatpush.bf16.msra.mxu1 %v3174_v25  ;;  %v3260_v15 = vld [vmem:[#allocation4 + $0x2f8] sm:$0xff]  ;;  %v304_v17 = vpack.c.bf16 %v280_v10, %v280_v10  ;;  %v3251_v22 = vld [vmem:[#allocation4 + $0x2b0] sm:$0xff]  ;;  %v3234_v24 = vld [vmem:[#allocation4 + $0x228] sm:$0xff] }
  0x47   : > { %1896 = vmatpush.bf16.msra.mxu2 %v3182_v26  ;;  %v3259_v23 = vld [vmem:[#allocation4 + $0x2f0] sm:$0xff]  ;;  %v3242_v25 = vld [vmem:[#allocation4 + $0x268] sm:$0xff]  ;;  %v3240_v33 = vld [vmem:[#allocation4 + $0x258] sm:$0xff] }
  0x48   : > { %1909 = vmatpush.bf16.msra.mxu3 %v3190_v27  ;;  %v3250_v26 = vld [vmem:[#allocation4 + $0x2a8] sm:$0xff]  ;;  %v3248_v34 = vld [vmem:[#allocation4 + $0x298] sm:$0xff]  ;;  %v3231_v36 = vld [vmem:[#allocation4 + $0x210] sm:$0xff] }
  0x49   : > { %1871 = vmatpush.bf16.msra.mxu0 %v3165_v28  ;;  %v3258_v27 = vld [vmem:[#allocation4 + $0x2e8] sm:$0xff]  ;;  %v3233_v28 = vld [vmem:[#allocation4 + $0x220] sm:$0xff]  ;;  %v3239_v37 = vld [vmem:[#allocation4 + $0x250] sm:$0xff] }
  0x4a   : > { %1884 = vmatpush.bf16.msra.mxu1 %v3173_v29  ;;  %v3241_v29 = vld [vmem:[#allocation4 + $0x260] sm:$0xff]  ;;  %v3272_v9 = vld [vmem:[#allocation4 + $0x358] sm:$0xff]  ;;  %v3263_v12 = vld [vmem:[#allocation4 + $0x310] sm:$0xff] }
  0x4b   : > { %1897 = vmatpush.bf16.msra.mxu2 %v3181_v30  ;;  %v3249_v30 = vld [vmem:[#allocation4 + $0x2a0] sm:$0xff]  ;;  %v3280_v10 = vld [vmem:[#allocation4 + $0x398] sm:$0xff]  ;;  %v3271_v13 = vld [vmem:[#allocation4 + $0x350] sm:$0xff] }
  0x4c   : > { %1910 = vmatpush.bf16.msra.mxu3 %v3189_v31  ;;  %1872 = vmatmul.bf16.vlgmr.msra.gmra.mxu0 %v300_v41  ;;  %v3257_v31 = vld [vmem:[#allocation4 + $0x2e0] sm:$0xff]  ;;  %v3238_v41 = vld [vmem:[#allocation4 + $0x248] sm:$0xff] }
  0x4d   : > { %1916 = vmatpush.bf16.msrb.mxu0 %v3204_v32  ;;  %1885 = vmatmul.bf16.vlgmr.msra.gmra.mxu1 %v301_v43  ;;  %v3232_v32 = vld [vmem:[#allocation4 + $0x218] sm:$0xff]  ;;  %v3254_v43 = vld [vmem:[#allocation4 + $0x2c8] sm:$0xff] }
  0x4e   : > { %1929 = vmatpush.bf16.msrb.mxu1 %v3212_v35  ;;  %1898 = vmatmul.bf16.vlgmr.msra.gmra.mxu2 %v302_v40  ;;  %v3256_v35 = vld [vmem:[#allocation4 + $0x2d8] sm:$0xff]  ;;  %v3230_v40 = vld [vmem:[#allocation4 + $0x208] sm:$0xff] }
  0x4f   : > { %1942 = vmatpush.bf16.msrb.mxu2 %v3220_v38  ;;  %1911 = vmatmul.bf16.vlgmr.msra.gmra.mxu3 %v303_v42  ;;  %v3247_v38 = vld [vmem:[#allocation4 + $0x290] sm:$0xff]  ;;  %v3246_v42 = vld [vmem:[#allocation4 + $0x288] sm:$0xff] }
  0x50   : > { %1955 = vmatpush.bf16.msrb.mxu3 %v3228_v39  ;;  %v3255_v39 = vld [vmem:[#allocation4 + $0x2d0] sm:$0xff] }
  0x51   : > { %1917 = vmatpush.bf16.msrb.mxu0 %v3203_v44  ;;  %v3229_v44 = vld [vmem:[#allocation4 + $0x200] sm:$0xff] }
  0x52   : > { %1930 = vmatpush.bf16.msrb.mxu1 %v3211_v45  ;;  %v3237_v45 = vld [vmem:[#allocation4 + $0x240] sm:$0xff] }
  0x53   : > { %1943 = vmatpush.bf16.msrb.mxu2 %v3219_v46  ;;  %v3245_v46 = vld [vmem:[#allocation4 + $0x280] sm:$0xff] }
  0x54   : > { %1956 = vmatpush.bf16.msrb.mxu3 %v3227_v47  ;;  %v3253_v47 = vld [vmem:[#allocation4 + $0x2c0] sm:$0xff] }
  0x55   : > { %1918 = vmatpush.bf16.msrb.mxu0 %v3202_v48  ;;  %v3268_v48 = vld [vmem:[#allocation4 + $0x338] sm:$0xff] }
  0x56   : > { %1931 = vmatpush.bf16.msrb.mxu1 %v3210_v49  ;;  %v284_v49 = vld [vmem:[%s3683_s23 + $0x40] sm:$0xff] }
  0x57   : > { %1944 = vmatpush.bf16.msrb.mxu2 %v3218_v50  ;;  %v286_v50 = vld [vmem:[%s3683_s23 + $0x50] sm:$0xff] }
  0x58   : > { %1957 = vmatpush.bf16.msrb.mxu3 %v3226_v51  ;;  %v3276_v51 = vld [vmem:[#allocation4 + $0x378] sm:$0xff] }
  0x59   : > { %1919 = vmatpush.bf16.msrb.mxu0 %v3201_v52  ;;  %v285_v52 = vld [vmem:[%s3683_s23 + $0x48] sm:$0xff] }
  0x5a   : > { %1932 = vmatpush.bf16.msrb.mxu1 %v3209_v53  ;;  %v287_v53 = vld [vmem:[%s3683_s23 + $0x58] sm:$0xff] }
  0x5b   : > { %1945 = vmatpush.bf16.msrb.mxu2 %v3217_v54  ;;  %v3284_v54 = vld [vmem:[#allocation4 + $0x3b8] sm:$0xff] }
  0x5c   : > { %1958 = vmatpush.bf16.msrb.mxu3 %v3225_v55  ;;  %v3292_v55 = vld [vmem:[#allocation4 + $0x3f8] sm:$0xff] }
  0x5d   : > { %1920 = vmatpush.bf16.msrb.mxu0 %v3200_v56  ;;  %v308_v56 = vpack.c.bf16 %v284_v49, %v284_v49  ;;  %v3304_v49 = vld [vmem:[#allocation4 + $0x458] sm:$0xff] }
  0x5e   : > { %1933 = vmatpush.bf16.msrb.mxu1 %v3208_v57  ;;  %v310_v57 = vpack.c.bf16 %v286_v50, %v286_v50  ;;  %v3312_v50 = vld [vmem:[#allocation4 + $0x498] sm:$0xff] }
  0x5f   : > { %1946 = vmatpush.bf16.msrb.mxu2 %v3216_v58  ;;  %v309_v58 = vpack.c.bf16 %v285_v52, %v285_v52  ;;  %v3295_v52 = vld [vmem:[#allocation4 + $0x410] sm:$0xff] }
  0x60   : > { %1959 = vmatpush.bf16.msrb.mxu3 %v3224_v59  ;;  %v311_v59 = vpack.c.bf16 %v287_v53, %v287_v53  ;;  %v3303_v53 = vld [vmem:[#allocation4 + $0x450] sm:$0xff] }
  0x61   : > { %1921 = vmatpush.bf16.msrb.mxu0 %v3199_v60  ;;  %v3267_v60 = vld [vmem:[#allocation4 + $0x330] sm:$0xff] }
  0x62   : > { %1934 = vmatpush.bf16.msrb.mxu1 %v3207_v61  ;;  %v3275_v61 = vld [vmem:[#allocation4 + $0x370] sm:$0xff] }
  0x63   : > { %1947 = vmatpush.bf16.msrb.mxu2 %v3215_v62  ;;  %v3283_v62 = vld [vmem:[#allocation4 + $0x3b0] sm:$0xff] }
  0x64   : > { %1960 = vmatpush.bf16.msrb.mxu3 %v3223_v63  ;;  %v3291_v63 = vld [vmem:[#allocation4 + $0x3f0] sm:$0xff] }
  0x65   : > { %1922 = vmatpush.bf16.msrb.mxu0 %v3198_v0  ;;  %v3266_v0 = vld [vmem:[#allocation4 + $0x328] sm:$0xff] }
  0x66   : > { %1935 = vmatpush.bf16.msrb.mxu1 %v3206_v1  ;;  %v3274_v1 = vld [vmem:[#allocation4 + $0x368] sm:$0xff] }
  0x67   : > { %1948 = vmatpush.bf16.msrb.mxu2 %v3214_v2  ;;  %v3282_v2 = vld [vmem:[#allocation4 + $0x3a8] sm:$0xff] }
  0x68   : > { %1961 = vmatpush.bf16.msrb.mxu3 %v3222_v3  ;;  %v3290_v3 = vld [vmem:[#allocation4 + $0x3e8] sm:$0xff] }
  0x69   : > { %1923 = vmatpush.bf16.msrb.mxu0 %v3197_v4  ;;  %v3265_v4 = vld [vmem:[#allocation4 + $0x320] sm:$0xff] }
  0x6a   : > { %1936 = vmatpush.bf16.msrb.mxu1 %v3205_v5  ;;  %v3273_v5 = vld [vmem:[#allocation4 + $0x360] sm:$0xff] }
  0x6b   : > { %1949 = vmatpush.bf16.msrb.mxu2 %v3213_v6  ;;  %v3281_v6 = vld [vmem:[#allocation4 + $0x3a0] sm:$0xff] }
  0x6c   : > { %1962 = vmatpush.bf16.msrb.mxu3 %v3221_v7  ;;  %1924 = vmatmul.bf16.vlgmr.msrb.gmra.mxu0 %v304_v17  ;;  %v3289_v7 = vld [vmem:[#allocation4 + $0x3e0] sm:$0xff]  ;;  %v3270_v17 = vld [vmem:[#allocation4 + $0x348] sm:$0xff] }
  0x6d   : > { %1968 = vmatpush.bf16.msra.mxu0 %v3236_v8  ;;  %1937 = vmatmul.bf16.vlgmr.msrb.gmra.mxu1 %v305_v19  ;;  %v3264_v8 = vld [vmem:[#allocation4 + $0x318] sm:$0xff]  ;;  %v3286_v19 = vld [vmem:[#allocation4 + $0x3c8] sm:$0xff] }
  0x6e   : > { %1981 = vmatpush.bf16.msra.mxu1 %v3244_v11  ;;  %1950 = vmatmul.bf16.vlgmr.msrb.gmra.mxu2 %v306_v16  ;;  %v3288_v11 = vld [vmem:[#allocation4 + $0x3d8] sm:$0xff]  ;;  %v3262_v16 = vld [vmem:[#allocation4 + $0x308] sm:$0xff] }
  0x6f   : > { %1994 = vmatpush.bf16.msra.mxu2 %v3252_v14  ;;  %1963 = vmatmul.bf16.vlgmr.msrb.gmra.mxu3 %v307_v18  ;;  %v3279_v14 = vld [vmem:[#allocation4 + $0x390] sm:$0xff]  ;;  %v3278_v18 = vld [vmem:[#allocation4 + $0x388] sm:$0xff] }
  0x70   : > { %2007 = vmatpush.bf16.msra.mxu3 %v3260_v15  ;;  %v3287_v15 = vld [vmem:[#allocation4 + $0x3d0] sm:$0xff] }
  0x71   : > { %1969 = vmatpush.bf16.msra.mxu0 %v3235_v20  ;;  %v3261_v20 = vld [vmem:[#allocation4 + $0x300] sm:$0xff] }
  0x72   : > { %1982 = vmatpush.bf16.msra.mxu1 %v3243_v21  ;;  %v3269_v21 = vld [vmem:[#allocation4 + $0x340] sm:$0xff] }
  0x73   : > { %1995 = vmatpush.bf16.msra.mxu2 %v3251_v22  ;;  %v3277_v22 = vld [vmem:[#allocation4 + $0x380] sm:$0xff] }
  0x74   : > { %2008 = vmatpush.bf16.msra.mxu3 %v3259_v23  ;;  %v3285_v23 = vld [vmem:[#allocation4 + $0x3c0] sm:$0xff] }
  0x75   : > { %1970 = vmatpush.bf16.msra.mxu0 %v3234_v24  ;;  %v3300_v24 = vld [vmem:[#allocation4 + $0x438] sm:$0xff] }
  0x76   : > { %1983 = vmatpush.bf16.msra.mxu1 %v3242_v25  ;;  %v288_v25 = vld [vmem:[%s3683_s23 + $0x60] sm:$0xff] }
  0x77   : > { %1996 = vmatpush.bf16.msra.mxu2 %v3250_v26  ;;  %v290_v26 = vld [vmem:[%s3683_s23 + $0x70] sm:$0xff] }
  0x78   : > { %2009 = vmatpush.bf16.msra.mxu3 %v3258_v27  ;;  %v3308_v27 = vld [vmem:[#allocation4 + $0x478] sm:$0xff] }
  0x79   : > { %1971 = vmatpush.bf16.msra.mxu0 %v3233_v28  ;;  %v289_v28 = vld [vmem:[%s3683_s23 + $0x68] sm:$0xff] }
  0x7a   : > { %1984 = vmatpush.bf16.msra.mxu1 %v3241_v29  ;;  %v291_v29 = vld [vmem:[%s3683_s23 + $0x78] sm:$0xff] }
  0x7b   : > { %1997 = vmatpush.bf16.msra.mxu2 %v3249_v30  ;;  %v3316_v30 = vld [vmem:[#allocation4 + $0x4b8] sm:$0xff] }
  0x7c   : > { %2010 = vmatpush.bf16.msra.mxu3 %v3257_v31  ;;  %v3324_v31 = vld [vmem:[#allocation4 + $0x4f8] sm:$0xff] }
  0x7d   : > { %1972 = vmatpush.bf16.msra.mxu0 %v3232_v32  ;;  %v312_v32 = vpack.c.bf16 %v288_v25, %v288_v25 }
  0x7e   : > { %1985 = vmatpush.bf16.msra.mxu1 %v3240_v33  ;;  %v314_v33 = vpack.c.bf16 %v290_v26, %v290_v26  ;;  %v3345_v26 = vld [vmem:[#allocation4 + $0x5a0] sm:$0xff] }
  0x7f   : > { %1998 = vmatpush.bf16.msra.mxu2 %v3248_v34  ;;  %v313_v34 = vpack.c.bf16 %v289_v28, %v289_v28 }
  0x80   : > { %2011 = vmatpush.bf16.msra.mxu3 %v3256_v35  ;;  %v315_v35 = vpack.c.bf16 %v291_v29, %v291_v29  ;;  %v3328_v29 = vld [vmem:[#allocation4 + $0x518] sm:$0xff] }
  0x81   : > { %1973 = vmatpush.bf16.msra.mxu0 %v3231_v36  ;;  %v3299_v36 = vld [vmem:[#allocation4 + $0x430] sm:$0xff] }
  0x82   : > { %1986 = vmatpush.bf16.msra.mxu1 %v3239_v37  ;;  %v3307_v37 = vld [vmem:[#allocation4 + $0x470] sm:$0xff] }
  0x83   : > { %1999 = vmatpush.bf16.msra.mxu2 %v3247_v38  ;;  %v3315_v38 = vld [vmem:[#allocation4 + $0x4b0] sm:$0xff] }
  0x84   : > { %2012 = vmatpush.bf16.msra.mxu3 %v3255_v39  ;;  %v3323_v39 = vld [vmem:[#allocation4 + $0x4f0] sm:$0xff] }
  0x85   : > { %1974 = vmatpush.bf16.msra.mxu0 %v3230_v40  ;;  %v3298_v40 = vld [vmem:[#allocation4 + $0x428] sm:$0xff] }
  0x86   : > { %1987 = vmatpush.bf16.msra.mxu1 %v3238_v41  ;;  %v3306_v41 = vld [vmem:[#allocation4 + $0x468] sm:$0xff] }
  0x87   : > { %2000 = vmatpush.bf16.msra.mxu2 %v3246_v42  ;;  %v3314_v42 = vld [vmem:[#allocation4 + $0x4a8] sm:$0xff] }
  0x88   : > { %2013 = vmatpush.bf16.msra.mxu3 %v3254_v43  ;;  %v3322_v43 = vld [vmem:[#allocation4 + $0x4e8] sm:$0xff] }
  0x89   : > { %1975 = vmatpush.bf16.msra.mxu0 %v3229_v44  ;;  %v3297_v44 = vld [vmem:[#allocation4 + $0x420] sm:$0xff] }
  0x8a   : > { %1988 = vmatpush.bf16.msra.mxu1 %v3237_v45  ;;  %v3305_v45 = vld [vmem:[#allocation4 + $0x460] sm:$0xff] }
  0x8b   : > { %2001 = vmatpush.bf16.msra.mxu2 %v3245_v46  ;;  %v3313_v46 = vld [vmem:[#allocation4 + $0x4a0] sm:$0xff] }
  0x8c   : > { %2014 = vmatpush.bf16.msra.mxu3 %v3253_v47  ;;  %1976 = vmatmul.bf16.vlgmr.msra.gmra.mxu0 %v308_v56  ;;  %v3321_v47 = vld [vmem:[#allocation4 + $0x4e0] sm:$0xff]  ;;  %v3294_v56 = vld [vmem:[#allocation4 + $0x408] sm:$0xff] }
  0x8d   : > { %2020 = vmatpush.bf16.msrb.mxu0 %v3268_v48  ;;  %1989 = vmatmul.bf16.vlgmr.msra.gmra.mxu1 %v309_v58  ;;  %v3296_v48 = vld [vmem:[#allocation4 + $0x418] sm:$0xff]  ;;  %v3310_v58 = vld [vmem:[#allocation4 + $0x488] sm:$0xff] }
  0x8e   : > { %2033 = vmatpush.bf16.msrb.mxu1 %v3276_v51  ;;  %2002 = vmatmul.bf16.vlgmr.msra.gmra.mxu2 %v310_v57  ;;  %v3320_v51 = vld [vmem:[#allocation4 + $0x4d8] sm:$0xff]  ;;  %v3302_v57 = vld [vmem:[#allocation4 + $0x448] sm:$0xff] }
  0x8f   : > { %2046 = vmatpush.bf16.msrb.mxu2 %v3284_v54  ;;  %2015 = vmatmul.bf16.vlgmr.msra.gmra.mxu3 %v311_v59  ;;  %v3311_v54 = vld [vmem:[#allocation4 + $0x490] sm:$0xff]  ;;  %v3318_v59 = vld [vmem:[#allocation4 + $0x4c8] sm:$0xff] }
  0x90   : > { %2059 = vmatpush.bf16.msrb.mxu3 %v3292_v55  ;;  %v3319_v55 = vld [vmem:[#allocation4 + $0x4d0] sm:$0xff] }
  0x91   : > { %2021 = vmatpush.bf16.msrb.mxu0 %v3267_v60  ;;  %v3293_v60 = vld [vmem:[#allocation4 + $0x400] sm:$0xff] }
  0x92   : > { %2034 = vmatpush.bf16.msrb.mxu1 %v3275_v61  ;;  %v3301_v61 = vld [vmem:[#allocation4 + $0x440] sm:$0xff] }
  0x93   : > { %2047 = vmatpush.bf16.msrb.mxu2 %v3283_v62  ;;  %v3309_v62 = vld [vmem:[#allocation4 + $0x480] sm:$0xff] }
  0x94   : > { %2060 = vmatpush.bf16.msrb.mxu3 %v3291_v63  ;;  %v3317_v63 = vld [vmem:[#allocation4 + $0x4c0] sm:$0xff] }
  0x95   : > { %2022 = vmatpush.bf16.msrb.mxu0 %v3266_v0  ;;  %v3332_v0 = vld [vmem:[#allocation4 + $0x538] sm:$0xff] }
  0x96   : > { %2035 = vmatpush.bf16.msrb.mxu1 %v3274_v1  ;;  %v292_v1 = vld [vmem:[%s3683_s23 + $0x80] sm:$0xff] }
  0x97   : > { %2048 = vmatpush.bf16.msrb.mxu2 %v3282_v2  ;;  %v294_v2 = vld [vmem:[%s3683_s23 + $0x90] sm:$0xff] }
  0x98   : > { %2061 = vmatpush.bf16.msrb.mxu3 %v3290_v3  ;;  %v3340_v3 = vld [vmem:[#allocation4 + $0x578] sm:$0xff] }
  0x99   : > { %2023 = vmatpush.bf16.msrb.mxu0 %v3265_v4  ;;  %v293_v4 = vld [vmem:[%s3683_s23 + $0x88] sm:$0xff] }
  0x9a   : > { %2036 = vmatpush.bf16.msrb.mxu1 %v3273_v5  ;;  %v295_v5 = vld [vmem:[%s3683_s23 + $0x98] sm:$0xff] }
  0x9b   : > { %2049 = vmatpush.bf16.msrb.mxu2 %v3281_v6  ;;  %v3348_v6 = vld [vmem:[#allocation4 + $0x5b8] sm:$0xff] }
  0x9c   : > { %2062 = vmatpush.bf16.msrb.mxu3 %v3289_v7  ;;  %v3356_v7 = vld [vmem:[#allocation4 + $0x5f8] sm:$0xff] }
  0x9d   : > { %2024 = vmatpush.bf16.msrb.mxu0 %v3264_v8  ;;  %v316_v8 = vpack.c.bf16 %v292_v1, %v292_v1 }
  0x9e   : > { %2037 = vmatpush.bf16.msrb.mxu1 %v3272_v9  ;;  %v318_v9 = vpack.c.bf16 %v294_v2, %v294_v2 }
  0x9f   : > { %2050 = vmatpush.bf16.msrb.mxu2 %v3280_v10  ;;  %v317_v10 = vpack.c.bf16 %v293_v4, %v293_v4 }
  0xa0   : > { %2063 = vmatpush.bf16.msrb.mxu3 %v3288_v11  ;;  %v319_v11 = vpack.c.bf16 %v295_v5, %v295_v5 }
  0xa1   : > { %2025 = vmatpush.bf16.msrb.mxu0 %v3263_v12  ;;  %v3331_v12 = vld [vmem:[#allocation4 + $0x530] sm:$0xff] }
  0xa2   : > { %2038 = vmatpush.bf16.msrb.mxu1 %v3271_v13  ;;  %v3339_v13 = vld [vmem:[#allocation4 + $0x570] sm:$0xff] }
  0xa3   : > { %2051 = vmatpush.bf16.msrb.mxu2 %v3279_v14  ;;  %v3347_v14 = vld [vmem:[#allocation4 + $0x5b0] sm:$0xff] }
  0xa4   : > { %2064 = vmatpush.bf16.msrb.mxu3 %v3287_v15  ;;  %v3355_v15 = vld [vmem:[#allocation4 + $0x5f0] sm:$0xff] }
  0xa5   : > { %2026 = vmatpush.bf16.msrb.mxu0 %v3262_v16  ;;  %v3330_v16 = vld [vmem:[#allocation4 + $0x528] sm:$0xff] }
  0xa6   : > { %2039 = vmatpush.bf16.msrb.mxu1 %v3270_v17  ;;  %v3338_v17 = vld [vmem:[#allocation4 + $0x568] sm:$0xff] }
  0xa7   : > { %2052 = vmatpush.bf16.msrb.mxu2 %v3278_v18  ;;  %v3430_v18 = vld [vmem:[%s3743_s2] ss:$0 sm:$0xff] }
  0xa8   : > { %2065 = vmatpush.bf16.msrb.mxu3 %v3286_v19  ;;  %v3346_v19 = vld [vmem:[#allocation4 + $0x5a8] sm:$0xff] }
  0xa9   : > { %2027 = vmatpush.bf16.msrb.mxu0 %v3261_v20  ;;  %v3354_v20 = vld [vmem:[#allocation4 + $0x5e8] sm:$0xff] }
  0xaa   : > { %2040 = vmatpush.bf16.msrb.mxu1 %v3269_v21 }
  0xab   : > { %2053 = vmatpush.bf16.msrb.mxu2 %v3277_v22  ;;  %v3329_v22 = vld [vmem:[#allocation4 + $0x520] sm:$0xff] }
  0xac   : > { %2066 = vmatpush.bf16.msrb.mxu3 %v3285_v23  ;;  %2028 = vmatmul.bf16.vlgmr.msrb.gmra.mxu0 %v312_v32  ;;  %v3337_v23 = vld [vmem:[#allocation4 + $0x560] sm:$0xff]  ;;  %v3352_v32 = vld [vmem:[#allocation4 + $0x5d8] sm:$0xff] }
  0xad   : > { %2072 = vmatpush.bf16.msra.mxu0 %v3300_v24  ;;  %2041 = vmatmul.bf16.vlgmr.msrb.gmra.mxu1 %v313_v34 }
  0xae   : > { %2085 = vmatpush.bf16.msra.mxu1 %v3308_v27  ;;  %2054 = vmatmul.bf16.vlgmr.msrb.gmra.mxu2 %v314_v33  ;;  %v3353_v27 = vld [vmem:[#allocation4 + $0x5e0] sm:$0xff] }
  0xaf   : > { %2098 = vmatpush.bf16.msra.mxu2 %v3316_v30  ;;  %2067 = vmatmul.bf16.vlgmr.msrb.gmra.mxu3 %v315_v35  ;;  %v3336_v30 = vld [vmem:[#allocation4 + $0x558] sm:$0xff] }
  0xb0   : > { %2111 = vmatpush.bf16.msra.mxu3 %v3324_v31  ;;  %v3344_v31 = vld [vmem:[#allocation4 + $0x598] sm:$0xff] }
  0xb1   : > { %2073 = vmatpush.bf16.msra.mxu0 %v3299_v36 }
  0xb2   : > { %2086 = vmatpush.bf16.msra.mxu1 %v3307_v37  ;;  %v3327_v37 = vld [vmem:[#allocation4 + $0x510] sm:$0xff] }
  0xb3   : > { %2099 = vmatpush.bf16.msra.mxu2 %v3315_v38  ;;  %v3335_v38 = vld [vmem:[#allocation4 + $0x550] sm:$0xff] }
  0xb4   : > { %2112 = vmatpush.bf16.msra.mxu3 %v3323_v39 }
  0xb5   : > { %2074 = vmatpush.bf16.msra.mxu0 %v3298_v40 }
  0xb6   : > { %2087 = vmatpush.bf16.msra.mxu1 %v3306_v41  ;;  %v3343_v41 = vld [vmem:[#allocation4 + $0x590] sm:$0xff] }
  0xb7   : > { %2100 = vmatpush.bf16.msra.mxu2 %v3314_v42  ;;  %v3351_v42 = vld [vmem:[#allocation4 + $0x5d0] sm:$0xff] }
  0xb8   : > { %2113 = vmatpush.bf16.msra.mxu3 %v3322_v43  ;;  %v3326_v43 = vld [vmem:[#allocation4 + $0x508] sm:$0xff] }
  0xb9   : > { %2075 = vmatpush.bf16.msra.mxu0 %v3297_v44  ;;  %v3334_v44 = vld [vmem:[#allocation4 + $0x548] sm:$0xff] }
  0xba   : > { %2088 = vmatpush.bf16.msra.mxu1 %v3305_v45  ;;  %v3342_v45 = vld [vmem:[#allocation4 + $0x588] sm:$0xff] }
  0xbb   : > { %2101 = vmatpush.bf16.msra.mxu2 %v3313_v46  ;;  %v3350_v46 = vld [vmem:[#allocation4 + $0x5c8] sm:$0xff] }
  0xbc   : > { %2114 = vmatpush.bf16.msra.mxu3 %v3321_v47 }
  0xbd   : > { %2076 = vmatpush.bf16.msra.mxu0 %v3296_v48 }
  0xbe   : > { %2089 = vmatpush.bf16.msra.mxu1 %v3304_v49  ;;  %v3325_v49 = vld [vmem:[#allocation4 + $0x500] sm:$0xff] }
  0xbf   : > { %2102 = vmatpush.bf16.msra.mxu2 %v3312_v50  ;;  %v3333_v50 = vld [vmem:[#allocation4 + $0x540] sm:$0xff] }
  0xc0   : > { %2115 = vmatpush.bf16.msra.mxu3 %v3320_v51  ;;  %v3341_v51 = vld [vmem:[#allocation4 + $0x580] sm:$0xff] }
  0xc1   : > { %2077 = vmatpush.bf16.msra.mxu0 %v3295_v52  ;;  %v296_v52 = vld [vmem:[%s3683_s23 + $0xa0] sm:$0xff] }
  0xc2   : > { %2090 = vmatpush.bf16.msra.mxu1 %v3303_v53  ;;  %v297_v53 = vld [vmem:[%s3683_s23 + $0xa8] sm:$0xff] }
  0xc3   : > { %2103 = vmatpush.bf16.msra.mxu2 %v3311_v54  ;;  %v3349_v54 = vld [vmem:[#allocation4 + $0x5c0] sm:$0xff] }
  0xc4   : > { %2116 = vmatpush.bf16.msra.mxu3 %v3319_v55  ;;  %v298_v55 = vld [vmem:[%s3683_s23 + $0xb0] sm:$0xff] }
  0xc5   : > { %2078 = vmatpush.bf16.msra.mxu0 %v3294_v56  ;;  %v299_v56 = vld [vmem:[%s3683_s23 + $0xb8] sm:$0xff] }
  0xc6   : > { %2091 = vmatpush.bf16.msra.mxu1 %v3302_v57  ;;  %v320_v57 = vpack.c.bf16 %v296_v52, %v296_v52 }
  0xc7   : > { %2104 = vmatpush.bf16.msra.mxu2 %v3310_v58  ;;  %v321_v58 = vpack.c.bf16 %v297_v53, %v297_v53 }
  0xc8   : > { %2117 = vmatpush.bf16.msra.mxu3 %v3318_v59  ;;  %v322_v59 = vpack.c.bf16 %v298_v55, %v298_v55 }
  0xc9   : > { %2079 = vmatpush.bf16.msra.mxu0 %v3293_v60  ;;  %v1873_v21 = vpop.f32.mrf.mxu0  ;;  %v323_v60 = vpack.c.bf16 %v299_v56, %v299_v56 }
  0xca   : > { %2092 = vmatpush.bf16.msra.mxu1 %v3301_v61  ;;  %v1874_v24 = vadd.f32 %v3430_v18, %v1873_v21  ;;  %v1886_v25 = vpop.f32.mrf.mxu1 }
  0xcb   : > { %2105 = vmatpush.bf16.msra.mxu2 %v3309_v62 }
  0xcc   : > { %2118 = vmatpush.bf16.msra.mxu3 %v3317_v63  ;;  %2080 = vmatmul.bf16.vlgmr.msra.gmra.mxu0 %v316_v8  ;;  %v1887_v28 = vadd.f32 %v1886_v25, %v1874_v24  ;;  %v3364_v25 = vld [vmem:[#allocation6 + $0x38] sm:$0xff] }
  0xcd   : > { %2124 = vmatpush.bf16.msrb.mxu0 %v3332_v0  ;;  %2093 = vmatmul.bf16.vlgmr.msra.gmra.mxu1 %v317_v10 }
  0xce   : > { %2137 = vmatpush.bf16.msrb.mxu1 %v3340_v3  ;;  %2106 = vmatmul.bf16.vlgmr.msra.gmra.mxu2 %v318_v9 }
  0xcf   : > { %2150 = vmatpush.bf16.msrb.mxu2 %v3348_v6  ;;  %2119 = vmatmul.bf16.vlgmr.msra.gmra.mxu3 %v319_v11 }
  0xd0   : > { %2163 = vmatpush.bf16.msrb.mxu3 %v3356_v7 }
  0xd1   : > { %2125 = vmatpush.bf16.msrb.mxu0 %v3331_v12  ;;  %v1899_v33 = vpop.f32.mrf.mxu2  ;;  %v1875_v36 = vpop.f32.mrf.mxu0 }
  0xd2   : > { %2138 = vmatpush.bf16.msrb.mxu1 %v3339_v13  ;;  %v1900_v34 = vadd.f32 %v1899_v33, %v1887_v28  ;;  %v1912_v35 = vpop.f32.mrf.mxu3  ;;  %v1888_v40 = vpop.f32.mrf.mxu1  ;;  %v3363_v28 = vld [vmem:[#allocation6 + $0x30] sm:$0xff]  ;;  %v3360_v33 = vld [vmem:[#allocation6 + $0x18] sm:$0xff] }
  0xd3   : > { %2151 = vmatpush.bf16.msrb.mxu2 %v3347_v14 }
  0xd4   : > { %2164 = vmatpush.bf16.msrb.mxu3 %v3355_v15  ;;  %v1913_v39 = vadd.f32 %v1912_v35, %v1900_v34  ;;  %v3359_v35 = vld [vmem:[#allocation6 + $0x10] sm:$0xff] }
  0xd5   : > { %2126 = vmatpush.bf16.msrb.mxu0 %v3330_v16 }
  0xd6   : > { %2139 = vmatpush.bf16.msrb.mxu1 %v3338_v17 }
  0xd7   : > { %2152 = vmatpush.bf16.msrb.mxu2 %v3346_v19 }
  0xd8   : > { %2165 = vmatpush.bf16.msrb.mxu3 %v3354_v20 }
  0xd9   : > { %2127 = vmatpush.bf16.msrb.mxu0 %v3329_v22  ;;  %v1901_v47 = vpop.f32.mrf.mxu2 }
  0xda   : > { %2140 = vmatpush.bf16.msrb.mxu1 %v3337_v23  ;;  %v1914_v48 = vpop.f32.mrf.mxu3 }
  0xdb   : > { %2153 = vmatpush.bf16.msrb.mxu2 %v3345_v26 }
  0xdc   : > { %2166 = vmatpush.bf16.msrb.mxu3 %v3353_v27 }
  0xdd   : > { %2128 = vmatpush.bf16.msrb.mxu0 %v3328_v29  ;;  %v3362_v29 = vld [vmem:[#allocation6 + $0x28] sm:$0xff] }
  0xde   : > { %2141 = vmatpush.bf16.msrb.mxu1 %v3336_v30 }
  0xdf   : > { %2154 = vmatpush.bf16.msrb.mxu2 %v3344_v31 }
  0xe0   : > { %2167 = vmatpush.bf16.msrb.mxu3 %v3352_v32  ;;  %v3361_v32 = vld [vmem:[#allocation6 + $0x20] sm:$0xff] }
  0xe1   : > { %2129 = vmatpush.bf16.msrb.mxu0 %v3327_v37  ;;  %v3358_v37 = vld [vmem:[#allocation6 + $0x8] sm:$0xff] }
  0xe2   : > { %2142 = vmatpush.bf16.msrb.mxu1 %v3335_v38 }
  0xe3   : > { %2155 = vmatpush.bf16.msrb.mxu2 %v3343_v41 }
  0xe4   : > { %2168 = vmatpush.bf16.msrb.mxu3 %v3351_v42  ;;  %v3357_v42 = vld [vmem:[#allocation6] sm:$0xff] }
  0xe5   : > { %2130 = vmatpush.bf16.msrb.mxu0 %v3326_v43 }
  0xe6   : > { %2143 = vmatpush.bf16.msrb.mxu1 %v3334_v44 }
  0xe7   : > { %2156 = vmatpush.bf16.msrb.mxu2 %v3342_v45 }
  0xe8   : > { %2169 = vmatpush.bf16.msrb.mxu3 %v3350_v46 }
  0xe9   : > { %2131 = vmatpush.bf16.msrb.mxu0 %v3325_v49  ;;  %v1925_v61 = vpop.f32.mrf.mxu0 }
  0xea   : > { %2144 = vmatpush.bf16.msrb.mxu1 %v3333_v50  ;;  %v1926_v62 = vadd.f32 %v1925_v61, %v1913_v39  ;;  %v1938_v63 = vpop.f32.mrf.mxu1 }
  0xeb   : > { %2157 = vmatpush.bf16.msrb.mxu2 %v3341_v51 }
  0xec   : > { %2170 = vmatpush.bf16.msrb.mxu3 %v3349_v54  ;;  %2132 = vmatmul.bf16.vlgmr.msrb.gmra.mxu0 %v320_v57  ;;  %v1939_v0 = vadd.f32 %v1938_v63, %v1926_v62 }
  0xed   : > { %2145 = vmatmul.bf16.vlgmr.msrb.gmra.mxu1 %v321_v58  ;;  %2246 = vmatpush.bf16.msra.mxu0 %v3364_v25 }
  0xee   : > { %2158 = vmatmul.bf16.vlgmr.msrb.gmra.mxu2 %v322_v59 }
  0xef   : > { %2171 = vmatmul.bf16.vlgmr.msrb.gmra.mxu3 %v323_v60 }
  0xf1   : > { %v1951_v1 = vpop.f32.mrf.mxu2  ;;  %v1927_v4 = vpop.f32.mrf.mxu0  ;;  %2247 = vmatpush.bf16.msra.mxu0 %v3363_v28 }
  0xf2   : > { %v1952_v2 = vadd.f32 %v1951_v1, %v1939_v0  ;;  %v1964_v3 = vpop.f32.mrf.mxu3  ;;  %v1940_v6 = vpop.f32.mrf.mxu1 }
  0xf4   : > { %v1965_v5 = vadd.f32 %v1964_v3, %v1952_v2  ;;  %v3431_v3 = vld [vmem:[%s3745_s4] ss:$0 sm:$0xff] }
  0xf5   : > { %2248 = vmatpush.bf16.msra.mxu0 %v3362_v29 }
  0xf9   : > { %v1953_v7 = vpop.f32.mrf.mxu2  ;;  %2249 = vmatpush.bf16.msra.mxu0 %v3361_v32 }
  0xfa   : > { %v1966_v8 = vpop.f32.mrf.mxu3 }
  0xfd   : > { %2250 = vmatpush.bf16.msra.mxu0 %v3360_v33 }
 0x101   : > { %2251 = vmatpush.bf16.msra.mxu0 %v3359_v35 }
 0x105   : > { %2252 = vmatpush.bf16.msra.mxu0 %v3358_v37 }
 0x109   : > { %v1977_v9 = vpop.f32.mrf.mxu0  ;;  %2253 = vmatpush.bf16.msra.mxu0 %v3357_v42 }
 0x10a   : > { %v1978_v10 = vadd.f32 %v1977_v9, %v1965_v5  ;;  %v1990_v11 = vpop.f32.mrf.mxu1 }
 0x10c   : > { %v1991_v12 = vadd.f32 %v1990_v11, %v1978_v10 }
 0x111   : > { %v2003_v13 = vpop.f32.mrf.mxu2  ;;  %v1979_v16 = vpop.f32.mrf.mxu0 }
 0x112   : > { %v2004_v14 = vadd.f32 %v2003_v13, %v1991_v12  ;;  %v2016_v15 = vpop.f32.mrf.mxu3  ;;  %v1992_v18 = vpop.f32.mrf.mxu1 }
 0x114   : > { %v2017_v17 = vadd.f32 %v2016_v15, %v2004_v14 }
 0x119   : > { %v2005_v19 = vpop.f32.mrf.mxu2 }
 0x11a   : > { %v2018_v20 = vpop.f32.mrf.mxu3 }
 0x129   : > { %v2029_v21 = vpop.f32.mrf.mxu0 }
 0x12a   : > { %v2042_v22 = vpop.f32.mrf.mxu1  ;;  %v2030_v39 = vadd.f32 %v2029_v21, %v2017_v17 }
 0x12c   : > { %v2043_v44 = vadd.f32 %v2042_v22, %v2030_v39 }
 0x131   : > { %v2055_v23 = vpop.f32.mrf.mxu2  ;;  %v2031_v26 = vpop.f32.mrf.mxu0 }
 0x132   : > { %v2068_v24 = vpop.f32.mrf.mxu3  ;;  %v2044_v27 = vpop.f32.mrf.mxu1  ;;  %v2056_v45 = vadd.f32 %v2055_v23, %v2043_v44 }
 0x134   : > { %v2069_v48 = vadd.f32 %v2068_v24, %v2056_v45 }
 0x139   : > { %v2057_v30 = vpop.f32.mrf.mxu2 }
 0x13a   : > { %v2070_v31 = vpop.f32.mrf.mxu3 }
 0x149   : > { %v2081_v34 = vpop.f32.mrf.mxu0 }
 0x14a   : > { %v2094_v36 = vpop.f32.mrf.mxu1  ;;  %v2082_v49 = vadd.f32 %v2081_v34, %v2069_v48 }
 0x14c   : > { %v2095_v50 = vadd.f32 %v2094_v36, %v2082_v49 }
 0x151   : > { %v2107_v38 = vpop.f32.mrf.mxu2  ;;  %v2083_v41 = vpop.f32.mrf.mxu0 }
 0x152   : > { %v2120_v40 = vpop.f32.mrf.mxu3  ;;  %v2096_v43 = vpop.f32.mrf.mxu1  ;;  %v2108_v51 = vadd.f32 %v2107_v38, %v2095_v50 }
 0x154   : > { %v2121_v52 = vadd.f32 %v2120_v40, %v2108_v51 }
 0x159   : > { %v2109_v46 = vpop.f32.mrf.mxu2 }
 0x15a   : > { %v2122_v47 = vpop.f32.mrf.mxu3 }
 0x169   : > { %v2133_v53 = vpop.f32.mrf.mxu0 }
 0x16a   : > { %v2146_v54 = vpop.f32.mrf.mxu1  ;;  %v2134_v55 = vadd.f32 %v2133_v53, %v2121_v52 }
 0x16c   : > { %v2147_v56 = vadd.f32 %v2146_v54, %v2134_v55 }
 0x171   : > { %v2159_v57 = vpop.f32.mrf.mxu2  ;;  %v2135_v60 = vpop.f32.mrf.mxu0 }
 0x172   : > { %v2172_v58 = vpop.f32.mrf.mxu3  ;;  %v2160_v59 = vadd.f32 %v2159_v57, %v2147_v56  ;;  %v2148_v61 = vpop.f32.mrf.mxu1 }
 0x174   : > { %v2173_v62 = vadd.f32 %v2172_v58, %v2160_v59 }
 0x176   : > { %v2176_v63 = vmax.f32 %v2173_v62, 0.0 }
 0x178   : > { %v2177_v0 = vpack.c.bf16 %v2176_v63, %v2176_v63 }
 0x179   : > { %v2161_v1 = vpop.f32.mrf.mxu2 }
 0x17a   : > { %v2174_v2 = vpop.f32.mrf.mxu3  ;;  %2254 = vmatmul.bf16.vlgmr.msra.gmra.mxu0 %v2177_v0 }
 0x1f7   : > { %v2255_v4 = vpop.f32.mrf.mxu0 }
 0x1f8   : > { %v2256_v5 = vadd.f32 %v3431_v3, %v2255_v4 }
 0x1fa   : > { %2259 = vmax.xlane.f32.xlu0 %v2256_v5 }
 0x1ff   : > { %v2257_v6 = vpop.f32.mrf.mxu0 }
 0x26d   : > { %v2260_v7 = vpop.xlane.xlu0 %2259 }
 0x26e   : > { %v2261_v8 = vsub.f32 %v2256_v5, %v2260_v7 }
 0x270   : > { %v2262_v9 = vmul.f32 1.442695, %v2261_v8 }
 0x272   : > { %3432 = vpow2.f32 %v2262_v9 }
 0x278   : > { %v3433_v10 = vpop.eup %3432 }
 0x279   : > { %2264 = vadd.xlane.f32.xlu0 %v3433_v10 }
 0x2ec   : > { %v2265_v11 = vpop.xlane.xlu0 %2264 }
 0x2ed   : > { %3434 = vrcp.f32 %v2265_v11 }
 0x2f3   : > { %v3435_v12 = vpop.eup %3434 }
 0x2f4   : > { %v2267_v13 = vmul.f32 %v3435_v12, %v3433_v10 }
 0x2f6   : > { %2268 = vst [vmem:[%s275_s30] sm:$0xff] %v2267_v13 }
 0x2f7 PF: > { %p16_p3 = scmp.ge.s32.totalorder %s3641_s11, 6   ;;  %s3750_s18 = smov %s3556_s19 }
 0x2f8   : > { %s3751_s19 = smov %s3560_s20  ;;  %s3752_s20 = smov %s3653_s14 }
 0x2f9   : > { %s3753_s21 = smov %s3641_s11  ;;  %18 = sbr.rel (!%p16_p3) target bundleno = 4 (0x4), region = 88 }
 0x2fe   :  { %2288 = vsyncpa [#allocation3], 1 }
 0x2ff   :  { %2290 = vsyncpa [#allocation3 + $0x1], 1 }
 0x300   :  { %2291 = vsyncpa [#allocation5], 1 }

</bundles_post_ra>
